<compile_context>
chip_gen: v6e
topology: v6e:2x2x1
jax: 0.10.0
libtpu: 0.0.40
codegen_flags: <defaults>
</compile_context>

<pallas_src>
import jax
import jax.numpy as jnp
from jax.experimental import pallas as pl
from jax.experimental.pallas import tpu as pltpu

_LANE = 128
# ~4 MiB per block; input + output double-buffered => ~16 MiB live in VMEM,
# safe on every generation (v5e 16 MiB default scoped is raised below).
_TARGET_BLOCK_BYTES = 4 * 1024 * 1024


def _identity_kernel(x_ref, o_ref):
    # Pure element-wise pass-through of the current VMEM tile.
    o_ref[...] = x_ref[...]


def _pick_lane_width(n: int) -> int:
    """Widest lane-dense (multiple-of-128) width that divides n, else 0."""
    for w in (8192, 4096, 2048, 1024, 512, 256, _LANE):
        if n % w == 0:
            return w
    return 0


def identity(x: jax.Array) -> jax.Array:
    """Identity forward pass: returns x unchanged (same shape, same dtype)."""
    orig_shape = x.shape
    dtype = x.dtype
    n = x.size
    if n == 0:
        return x

    width = _pick_lane_width(n)
    if width == 0:
        # Rare ragged case (total size not a multiple of 128): copy the whole
        # array as a single block; block dims equal to the full extents always
        # satisfy the (8,128) rule.
        # TODO(synk): factor very large non-128-divisible sizes into multiple
        # full-extent trailing blocks instead of one VMEM-resident block.
        rows, block_rows = 1, 1
        width = n
        x2d = x.reshape(1, n)
    else:
        rows = n // width
        x2d = x.reshape(rows, width)  # contiguous reshape: metadata only, no HBM pass
        itemsize = jnp.dtype(dtype).itemsize
        block_rows = _TARGET_BLOCK_BYTES // (width * itemsize)
        # Multiple of 32 sublanes keeps the block legal & unpacked for f32/bf16/int8.
        block_rows = (block_rows // 32) * 32
        if block_rows < 32 or block_rows >= rows:
            block_rows = rows  # full-extent block -> always legal, single DMA stream

    grid = (pl.cdiv(rows, block_rows),)

    out2d = pl.pallas_call(
        _identity_kernel,
        out_shape=jax.ShapeDtypeStruct((rows, width), dtype),
        grid_spec=pltpu.PrefetchScalarGridSpec(
            num_scalar_prefetch=0,
            grid=grid,
            in_specs=[pl.BlockSpec((block_rows, width), lambda i: (i, 0))],
            out_specs=pl.BlockSpec((block_rows, width), lambda i: (i, 0)),
        ),
        compiler_params=pltpu.CompilerParams(
            dimension_semantics=("parallel",),       # shards grid across TCs on v7x
            vmem_limit_bytes=32 * 1024 * 1024,       # headroom for 4 MiB double-buffered blocks
        ),
    )(x2d)

    return out2d.reshape(orig_shape)


if __name__ == "__main__":
    key = jax.random.PRNGKey(0)

    # Primary test: small NCHW input, batch=2, channels=4, spatial=16x16 (f32).
    x = jax.random.normal(key, (2, 4, 16, 16), dtype=jnp.float32)
    y = jax.block_until_ready(identity(x))
    assert y.shape == x.shape, (y.shape, x.shape)
    assert y.dtype == x.dtype, (y.dtype, x.dtype)
    assert jnp.array_equal(y, x), "identity kernel output mismatch (f32)"

    # Sub-32-bit dtype path (bf16), lane-dense total size.
    xb = jax.random.normal(key, (4, 16, 16), dtype=jnp.bfloat16)
    yb = jax.block_until_ready(identity(xb))
    assert yb.shape == xb.shape and yb.dtype == xb.dtype
    assert jnp.array_equal(yb, xb), "identity kernel output mismatch (bf16)"

    # Ragged fallback path: total size not a multiple of 128.
    xr = jax.random.normal(key, (3, 5, 7), dtype=jnp.float32)
    yr = jax.block_until_ready(identity(xr))
    assert yr.shape == xr.shape and yr.dtype == xr.dtype
    assert jnp.array_equal(yr, xr), "identity kernel output mismatch (ragged)"

    print("KERNEL_OK")
</pallas_src>

<mosaic_0001>
module attributes {stable_mosaic.version = 11 : i64} {
  func.func @_identity_kernel(%arg0: i32, %arg1: memref<1x2048xf32, #tpu.memory_space<vmem>>, %arg2: memref<1x2048xf32, #tpu.memory_space<vmem>>) attributes {dimension_semantics = [#tpu.dimension_semantics<parallel>], iteration_bounds = array<i64: 1>, scalar_prefetch = 0 : i64, scratch_operands = 0 : i64, tpu.core_type = #tpu.core_type<tc>, window_params = [{transform_indices = @transform_0, window_bounds = array<i64: 1, 2048>}, {transform_indices = @transform_1, window_bounds = array<i64: 1, 2048>}]} {
    %c0 = arith.constant 0 : index
    %c0_0 = arith.constant 0 : index
    %0 = vector.load %arg1[%c0, %c0_0] : memref<1x2048xf32, #tpu.memory_space<vmem>>, vector<1x2048xf32>
    %c0_1 = arith.constant 0 : index
    %c0_2 = arith.constant 0 : index
    %1 = vector.load %arg2[%c0_1, %c0_2] : memref<1x2048xf32, #tpu.memory_space<vmem>>, vector<1x2048xf32>
    tpu.vector_store %arg2[%c0_1, %c0_2], %0 {strides = array<i32>} : memref<1x2048xf32, #tpu.memory_space<vmem>>, vector<1x2048xf32>,
    return
  }
  func.func @transform_0(%arg0: i32) -> (i32, i32) {
    %c0_i32 = arith.constant 0 : i32
    %c0_i32_0 = arith.constant 0 : i32
    return %arg0, %c0_i32 : i32, i32
  }
  func.func @transform_1(%arg0: i32) -> (i32, i32) {
    %c0_i32 = arith.constant 0 : i32
    %c0_i32_0 = arith.constant 0 : i32
    return %arg0, %c0_i32 : i32, i32
  }
}

</mosaic_0001>

<bundles_post_ra>
// kernel: tpu_custom_call.1
= control target key start
LH: loop header
LB: loop body
LE: loop exit
PB: predicated region body
PF: predicated region fallthrough
CT: control target
= control target key end

     0   :  { %6 = vsyncpa [#allocation3], 0  ;;  %s104_s0 = inlined_call_operand.hbm [shape: f32[1,2048], index: 0, kind: input, shape index: {}]   ;;  %s105_s1 = inlined_call_operand.hbm [shape: f32[1,2048], index: 1, kind: output, shape index: {}]  }
   0x1   :  { %7 = vsyncpa [#allocation4], 0  ;;  %s86_s6 = smov [#allocation2]  }
   0x2   :  { %s14_s7 = sshll.u32 %s86_s6, 4  ;;  %s15_s7 = int_to_ptr.vmem [resolvable:$true] %s14_s7 }
   0x3   :  { %s50_s8 = scalar_lea.vmem %s15_s7, 256  ;;  %p55_p1 = scmp.lt.s32.totalorder %s15_s7, %s15_s7 }
   0x4   :  { %p51_p0 = scmp.ne.s32.totalorder %s15_s7, %s50_s8  ;;  %p56_p2 = scmp.lt.s32.totalorder %s50_s8, %s50_s8 }
   0x6   :  { %p57_p3 = por %p56_p2, %p55_p1 }
   0x8   :  { %p58_p4 = pnand %p57_p3, %p51_p0 }
   0xa   :  { %61 = shalt.err (!%p58_p4)
}
   0xb   :  { %17 = dma.hbm_to_vmem [thread:$0]  %s104_s0, 256, %s15_s7, [#allocation3]  }
   0xc   :  { %82 = dma.done.wait [#allocation3], 256  }
   0xd   :  { %83 = vsyncadd [#allocation3], 4294967040  ;;  %s87_s11 = smov [#allocation5]   ;;  %v21_v0 = vld [vmem:[#allocation2] sm:$0xff]  ;;  %v22_v1 = vld [vmem:[#allocation2 + $0x8] sm:$0xff] }
   0xe   :  { %s31_s12 = sshll.u32 %s87_s11, 4  ;;  %23 = vst [vmem:[#allocation5] sm:$0xff] %v21_v0  ;;  %24 = vst [vmem:[#allocation5 + $0x8] sm:$0xff] %v22_v1  ;;  %s32_s12 = int_to_ptr.vmem [resolvable:$true] %s31_s12 }
   0xf   :  { %s62_s13 = scalar_lea.vmem %s32_s12, 256  ;;  %p67_p6 = scmp.lt.s32.totalorder %s32_s12, %s32_s12 }
  0x10   :  { %p63_p5 = scmp.ne.s32.totalorder %s32_s12, %s62_s13  ;;  %p68_p7 = scmp.lt.s32.totalorder %s62_s13, %s62_s13 }
  0x12   :  { %p69_p8 = por %p68_p7, %p67_p6 }
  0x14   :  { %p70_p9 = pnand %p69_p8, %p63_p5 }
  0x16   :  { %73 = shalt.err (!%p70_p9)
}
  0x17   :  { %34 = dma.vmem_to_hbm [thread:$0]  %s32_s12, 256, %s105_s1, [#allocation4]  }
  0x18   :  { %84 = dma.done.wait [#allocation4], 256  }
  0x19   :  { %85 = vsyncadd [#allocation4], 4294967040 }
  0x1a   :  { %38 = vsyncpa [#allocation3], 1 }
  0x1b   :  { %39 = vsyncpa [#allocation4], 1 }

</bundles_post_ra>
